<compile_context>
chip_gen: v7x
topology: tpu7x:2x2x1
jax: 0.10.0
libtpu: 0.0.40
codegen_flags: <defaults>
</compile_context>

<pallas_src>
import math

import jax
import jax.numpy as jnp
from jax.experimental import pallas as pl
from jax.experimental.pallas import tpu as pltpu


def _make_biaffine_kernel(n_out, bias_x, bias_y, compute_dtype):
    compute_dtype = jnp.dtype(compute_dtype)

    def kernel(x_ref, y_ref, a_ref, bcol_ref, crow_ref, d_ref, o_ref, yc_ref):
        # x_ref:    [1, tlx, n_in]
        # y_ref:    [1, tly, n_in]        (per batch/Ly-tile)
        # a_ref:    [n_out, n_in, n_in]   (weight core, VMEM-resident)
        # bcol_ref: [n_out, n_in]         (bias_y column of W)
        # crow_ref: [n_out, n_in]         (bias_x row of W)
        # d_ref:    [n_out, 1]            (corner scalar of W)
        # o_ref:    [1, n_out, tlx, tly]
        # yc_ref:   [n_out, tly] f32 scratch (hoisted column bias)
        f32 = jnp.float32

        if bias_x:
            # Only depends on y: compute once per (batch, Ly-tile), i.e. when
            # the innermost (Lx-tile) grid index wraps to 0.
            @pl.when(pl.program_id(2) == 0)
            def _():
                yc = jax.lax.dot_general(
                    crow_ref[...], y_ref[0], (((1,), (1,)), ((), ())),
                    preferred_element_type=f32)              # [n_out, tly]
                yc_ref[...] = yc + d_ref[...]                # corner broadcast

        x = x_ref[0]                                         # [tlx, n_in]
        y = y_ref[0]                                         # [tly, n_in]

        if bias_y:
            # Row bias: xb[:, o] = x @ W[o, :n_in, n_in]     -> [tlx, n_out]
            xb = jax.lax.dot_general(x, bcol_ref[...], (((1,), (1,)), ((), ())),
                                     preferred_element_type=f32)

        for o in range(n_out):            # n_out is tiny (2): static unroll
            xa = jax.lax.dot_general(x, a_ref[o], (((1,), (0,)), ((), ())),
                                     preferred_element_type=f32)   # [tlx, n_in]
            if compute_dtype != jnp.float32:
                # bf16 operands for the second MXU matmul; accumulation stays
                # f32 via preferred_element_type.
                xa = xa.astype(compute_dtype)
            s = jax.lax.dot_general(xa, y, (((1,), (1,)), ((), ())),
                                    preferred_element_type=f32)    # [tlx, tly]
            if bias_y:
                s = s + xb[:, o:o + 1]
            if bias_x:
                s = s + yc_ref[o:o + 1, :]
            o_ref[0, o] = s.astype(o_ref.dtype)

    return kernel


def biaffine_pallas(x, y, weight, *, bias_x=True, bias_y=True,
                    lx_tile=512, ly_tile=2048,
                    out_dtype=None, compute_dtype=None):
    """Biaffine scores: s[b,o,i,j] = [x_i;1]^T W_o [y_j;1].

    x: [B, Lx, n_in], y: [B, Ly, n_in],
    weight: [n_out, n_in + bias_x, n_in + bias_y].
    Returns [B, n_out, Lx, Ly] in `out_dtype` (default: promoted input dtype;
    pass jnp.bfloat16 to halve HBM writeback on this writeback-bound op).
    `compute_dtype` (default x.dtype) sets the MXU operand dtype; accumulation
    is always float32.
    """
    B, Lx, n_in = x.shape
    By, Ly, n_in_y = y.shape
    assert By == B and n_in_y == n_in
    n_out = weight.shape[0]
    assert weight.shape == (n_out, n_in + int(bias_x), n_in + int(bias_y))

    if out_dtype is None:
        out_dtype = jnp.result_type(x.dtype, y.dtype, weight.dtype)
    out_dtype = jnp.dtype(out_dtype)
    compute_dtype = jnp.dtype(compute_dtype if compute_dtype is not None
                              else x.dtype)

    # Split W into core / bias pieces (bias folded algebraically; contraction
    # dim stays exactly n_in, no ones-concat, no HBM copies of x/y).
    w = weight.astype(jnp.float32)
    a = w[:, :n_in, :n_in].astype(compute_dtype)                   # [n_out, n_in, n_in]
    if bias_y:
        bcol = w[:, :n_in, n_in].astype(compute_dtype)             # [n_out, n_in]
    else:
        bcol = jnp.zeros((n_out, n_in), compute_dtype)
    if bias_x:
        crow = w[:, n_in, :n_in].astype(compute_dtype)             # [n_out, n_in]
    else:
        crow = jnp.zeros((n_out, n_in), compute_dtype)
    if bias_x and bias_y:
        d = w[:, n_in, n_in][:, None]                              # [n_out, 1] f32
    else:
        d = jnp.zeros((n_out, 1), jnp.float32)

    x = x.astype(compute_dtype)
    y = y.astype(compute_dtype)

    # Tile sizes.  Block dims are multiples of 8 (sublane) / 128 (lane) or the
    # full array dim; trailing partial blocks get masked stores, so there is no
    # HBM padding and no whole-tensor post-slice.
    if Lx < 8:
        tlx = Lx
    else:
        tlx = min(max(lx_tile // 8, 1) * 8, (Lx // 8) * 8)
    if Ly < 128:
        tly = Ly
    else:
        tly = min(max(ly_tile // 128, 1) * 128, (Ly // 128) * 128)

    isz = jnp.dtype(compute_dtype).itemsize
    osz = out_dtype.itemsize

    def vmem_bytes(tlx_, tly_):
        return (2 * (tlx_ + tly_) * n_in * isz                 # x, y (double-buffered)
                + 2 * n_out * (n_in * n_in + 2 * n_in) * isz   # A, bcol, crow
                + 2 * n_out * 4                                # d
                + 2 * n_out * tlx_ * tly_ * osz                # output tile (x2)
                + n_out * tly_ * 4)                            # yc scratch

    # Keep the working set well under v7x's 64 MiB physical VMEM.
    budget = 40 << 20
    while vmem_bytes(tlx, tly) > budget and (tlx > 64 or tly > 512):
        if tlx > 64 and (tlx >= tly or tly <= 512):
            tlx = max(64, (tlx // 2 // 8) * 8)
        else:
            tly = max(512, (tly // 2 // 128) * 128)

    vmem_limit = int(min(max(vmem_bytes(tlx, tly) * 5 // 4 + (4 << 20), 32 << 20),
                         48 << 20))

    grid = (B, pl.cdiv(Ly, tly), pl.cdiv(Lx, tlx))

    flops = int(2 * B * n_out * Lx * n_in * (n_in + Ly)
                + 2 * B * n_out * n_in * (Lx + Ly))
    bytes_accessed = int(x.size * isz + y.size * isz + a.size * isz
                         + bcol.size * isz + crow.size * isz + d.size * 4
                         + B * n_out * Lx * Ly * osz)

    kernel = _make_biaffine_kernel(n_out, bias_x, bias_y, compute_dtype)

    out = pl.pallas_call(
        kernel,
        out_shape=jax.ShapeDtypeStruct((B, n_out, Lx, Ly), out_dtype),
        grid_spec=pltpu.PrefetchScalarGridSpec(
            num_scalar_prefetch=0,
            grid=grid,
            in_specs=[
                # x: streamed per Lx tile (innermost grid axis).
                pl.BlockSpec((1, tlx, n_in), lambda b, j, i: (b, i, 0)),
                # y: re-fetched only when the (batch, Ly-tile) index changes.
                pl.BlockSpec((1, tly, n_in), lambda b, j, i: (b, j, 0)),
                # Weight pieces: constant index maps -> DMA'd once, VMEM-resident.
                pl.BlockSpec((n_out, n_in, n_in), lambda b, j, i: (0, 0, 0)),
                pl.BlockSpec((n_out, n_in), lambda b, j, i: (0, 0)),
                pl.BlockSpec((n_out, n_in), lambda b, j, i: (0, 0)),
                pl.BlockSpec((n_out, 1), lambda b, j, i: (0, 0)),
            ],
            out_specs=pl.BlockSpec((1, n_out, tlx, tly),
                                   lambda b, j, i: (b, 0, i, j)),
            scratch_shapes=[pltpu.VMEM((n_out, tly), jnp.float32)],   # yc
        ),
        compiler_params=pltpu.CompilerParams(
            # Lx axis carries the hoisted yc scratch, so it must be
            # "arbitrary" when bias_x is enabled.
            dimension_semantics=("parallel", "parallel",
                                 "arbitrary" if bias_x else "parallel"),
            vmem_limit_bytes=vmem_limit,
        ),
        cost_estimate=pl.CostEstimate(flops=flops, transcendentals=0,
                                      bytes_accessed=bytes_accessed),
    )(x, y, a, bcol, crow, d)
    return out


def init_biaffine_weight(key, n_in, n_out=2, bias_x=True, bias_y=True):
    """Deterministic xavier_normal_ equivalent for weight of shape
    (n_out, n_in + bias_x, n_in + bias_y)."""
    I = n_in + int(bias_x)
    J = n_in + int(bias_y)
    fan_in = I * J
    fan_out = n_out * J
    std = math.sqrt(2.0 / (fan_in + fan_out))
    return std * jax.random.normal(key, (n_out, I, J), dtype=jnp.float32)


def biaffine_reference(x, y, weight, *, bias_x=True, bias_y=True):
    if bias_x:
        x = jnp.concatenate([x, jnp.ones_like(x[..., :1])], axis=-1)
    if bias_y:
        y = jnp.concatenate([y, jnp.ones_like(y[..., :1])], axis=-1)
    return jnp.einsum('bxi,oij,byj->boxy', x, weight, y,
                      precision=jax.lax.Precision.HIGHEST)


if __name__ == "__main__":
    key = jax.random.PRNGKey(0)
    kx, ky, kw = jax.random.split(key, 3)

    B, L, n_in, n_out = 2, 8, 32, 2
    weight = init_biaffine_weight(kw, n_in, n_out, bias_x=True, bias_y=True)

    # 1) Small, clean shape (no partial blocks).
    x = jax.random.normal(kx, (B, L, n_in), dtype=jnp.float32)
    y = jax.random.normal(ky, (B, L, n_in), dtype=jnp.float32)
    s = jax.block_until_ready(biaffine_pallas(x, y, weight))
    s_ref = biaffine_reference(x, y, weight)
    assert s.shape == (B, n_out, L, L)
    assert s.dtype == jnp.float32
    assert jnp.allclose(s, s_ref, atol=1e-4, rtol=1e-4)

    # 2) Awkward shape exercising the masked trailing Lx/Ly blocks
    #    (no HBM padding, no whole-tensor post-slice copy).
    Lx2, Ly2 = 13, 200
    x2 = jax.random.normal(kx, (B, Lx2, n_in), dtype=jnp.float32)
    y2 = jax.random.normal(ky, (B, Ly2, n_in), dtype=jnp.float32)
    s2 = jax.block_until_ready(biaffine_pallas(x2, y2, weight))
    s2_ref = biaffine_reference(x2, y2, weight)
    assert s2.shape == (B, n_out, Lx2, Ly2)
    assert jnp.allclose(s2, s2_ref, atol=1e-3, rtol=1e-3)

    print("KERNEL_OK")
</pallas_src>

<mosaic_0001>
module attributes {stable_mosaic.version = 11 : i64} {
  func.func @kernel(%arg0: i32, %arg1: i32, %arg2: i32, %arg3: memref<1x8x32xf32, #tpu.memory_space<vmem>>, %arg4: memref<1x8x32xf32, #tpu.memory_space<vmem>>, %arg5: memref<2x32x32xf32, #tpu.memory_space<vmem>>, %arg6: memref<2x32xf32, #tpu.memory_space<vmem>>, %arg7: memref<2x32xf32, #tpu.memory_space<vmem>>, %arg8: memref<2x1xf32, #tpu.memory_space<vmem>>, %arg9: memref<1x2x8x8xf32, #tpu.memory_space<vmem>>, %arg10: memref<2x8xf32, #tpu.memory_space<vmem>>) attributes {dimension_semantics = [#tpu.dimension_semantics<parallel>, #tpu.dimension_semantics<parallel>, #tpu.dimension_semantics<arbitrary>], iteration_bounds = array<i64: 2, 1, 1>, scalar_prefetch = 0 : i64, scratch_operands = 1 : i64, tpu.core_type = #tpu.core_type<tc>, window_params = [{transform_indices = @transform_0, window_bounds = array<i64: 1, 8, 32>}, {transform_indices = @transform_1, window_bounds = array<i64: 1, 8, 32>}, {pipeline_mode = #tpu.pipeline_mode<synchronous>, transform_indices = @transform_2, window_bounds = array<i64: 2, 32, 32>}, {pipeline_mode = #tpu.pipeline_mode<synchronous>, transform_indices = @transform_3, window_bounds = array<i64: 2, 32>}, {pipeline_mode = #tpu.pipeline_mode<synchronous>, transform_indices = @transform_4, window_bounds = array<i64: 2, 32>}, {pipeline_mode = #tpu.pipeline_mode<synchronous>, transform_indices = @transform_5, window_bounds = array<i64: 2, 1>}, {transform_indices = @transform_6, window_bounds = array<i64: 1, 2, 8, 8>}]} {
    %c0_i32 = arith.constant 0 : i32
    %0 = arith.cmpi eq, %arg2, %c0_i32 : i32
    %1 = arith.extui %0 : i1 to i32
    %c0_i32_0 = arith.constant 0 : i32
    %2 = arith.cmpi ne, %1, %c0_i32_0 : i32
    scf.if %2 {
      %c0_29 = arith.constant 0 : index
      %c0_30 = arith.constant 0 : index
      %35 = vector.load %arg7[%c0_29, %c0_30] : memref<2x32xf32, #tpu.memory_space<vmem>>, vector<2x32xf32>
      %c0_31 = arith.constant 0 : index
      %c0_32 = arith.constant 0 : index
      %c0_33 = arith.constant 0 : index
      %36 = vector.load %arg4[%c0_31, %c0_32, %c0_33] : memref<1x8x32xf32, #tpu.memory_space<vmem>>, vector<1x8x32xf32>
      %37 = vector.shape_cast %36 : vector<1x8x32xf32> to vector<8x32xf32>
      %cst_34 = arith.constant dense<0.000000e+00> : vector<2x8xf32>
      %38 = tpu.matmul %35, %37, %cst_34 {dimension_numbers = #tpu.dot_dimension_numbers<[1], [1], [0], [0], [0, 0, 1, 0], [], []>} : vector<2x32xf32>, vector<8x32xf32>, vector<2x8xf32> -> vector<2x8xf32>
      %c0_35 = arith.constant 0 : index
      %c0_36 = arith.constant 0 : index
      %39 = vector.load %arg8[%c0_35, %c0_36] : memref<2x1xf32, #tpu.memory_space<vmem>>, vector<2x1xf32>
      %40 = vector.broadcast %39 : vector<2x1xf32> to vector<2x8xf32>
      %41 = arith.addf %38, %40 : vector<2x8xf32>
      %c0_37 = arith.constant 0 : index
      %c0_38 = arith.constant 0 : index
      %42 = vector.load %arg10[%c0_37, %c0_38] : memref<2x8xf32, #tpu.memory_space<vmem>>, vector<2x8xf32>
      tpu.vector_store %arg10[%c0_37, %c0_38], %41 {strides = array<i32>} : memref<2x8xf32, #tpu.memory_space<vmem>>, vector<2x8xf32>,
    } else {
    }
    %c0 = arith.constant 0 : index
    %c0_1 = arith.constant 0 : index
    %c0_2 = arith.constant 0 : index
    %3 = vector.load %arg3[%c0, %c0_1, %c0_2] : memref<1x8x32xf32, #tpu.memory_space<vmem>>, vector<1x8x32xf32>
    %4 = vector.shape_cast %3 : vector<1x8x32xf32> to vector<8x32xf32>
    %c0_3 = arith.constant 0 : index
    %c0_4 = arith.constant 0 : index
    %c0_5 = arith.constant 0 : index
    %5 = vector.load %arg4[%c0_3, %c0_4, %c0_5] : memref<1x8x32xf32, #tpu.memory_space<vmem>>, vector<1x8x32xf32>
    %6 = vector.shape_cast %5 : vector<1x8x32xf32> to vector<8x32xf32>
    %c0_6 = arith.constant 0 : index
    %c0_7 = arith.constant 0 : index
    %7 = vector.load %arg6[%c0_6, %c0_7] : memref<2x32xf32, #tpu.memory_space<vmem>>, vector<2x32xf32>
    %cst = arith.constant dense<0.000000e+00> : vector<8x2xf32>
    %8 = tpu.matmul %4, %7, %cst {dimension_numbers = #tpu.dot_dimension_numbers<[1], [1], [0], [0], [0, 0, 1, 0], [], []>} : vector<8x32xf32>, vector<2x32xf32>, vector<8x2xf32> -> vector<8x2xf32>
    %c0_8 = arith.constant 0 : index
    %c0_9 = arith.constant 0 : index
    %c0_10 = arith.constant 0 : index
    %9 = vector.load %arg5[%c0_8, %c0_9, %c0_10] : memref<2x32x32xf32, #tpu.memory_space<vmem>>, vector<1x32x32xf32>
    %10 = vector.shape_cast %9 : vector<1x32x32xf32> to vector<32x32xf32>
    %cst_11 = arith.constant dense<0.000000e+00> : vector<8x32xf32>
    %11 = tpu.matmul %4, %10, %cst_11 {dimension_numbers = #tpu.dot_dimension_numbers<[1], [0], [0], [1], [0, 0, 1, 1], [], []>} : vector<8x32xf32>, vector<32x32xf32>, vector<8x32xf32> -> vector<8x32xf32>
    %cst_12 = arith.constant dense<0.000000e+00> : vector<8x8xf32>
    %12 = tpu.matmul %11, %6, %cst_12 {dimension_numbers = #tpu.dot_dimension_numbers<[1], [1], [0], [0], [0, 0, 1, 0], [], []>} : vector<8x32xf32>, vector<8x32xf32>, vector<8x8xf32> -> vector<8x8xf32>
    %13 = vector.extract_strided_slice %8 {offsets = [0, 0], sizes = [8, 1], strides = [1, 1]} : vector<8x2xf32> to vector<8x1xf32>
    %14 = vector.broadcast %13 : vector<8x1xf32> to vector<8x8xf32>
    %15 = arith.addf %12, %14 : vector<8x8xf32>
    %c0_13 = arith.constant 0 : index
    %c0_14 = arith.constant 0 : index
    %16 = vector.load %arg10[%c0_13, %c0_14] : memref<2x8xf32, #tpu.memory_space<vmem>>, vector<1x8xf32>
    %17 = vector.broadcast %16 : vector<1x8xf32> to vector<8x8xf32>
    %18 = arith.addf %15, %17 : vector<8x8xf32>
    %c0_15 = arith.constant 0 : index
    %c0_16 = arith.constant 0 : index
    %c0_17 = arith.constant 0 : index
    %c0_18 = arith.constant 0 : index
    %19 = vector.load %arg9[%c0_15, %c0_16, %c0_17, %c0_18] : memref<1x2x8x8xf32, #tpu.memory_space<vmem>>, vector<1x1x8x8xf32>
    %20 = vector.shape_cast %19 : vector<1x1x8x8xf32> to vector<8x8xf32>
    %21 = vector.shape_cast %18 : vector<8x8xf32> to vector<1x1x8x8xf32>
    tpu.vector_store %arg9[%c0_15, %c0_16, %c0_17, %c0_18], %21 {strides = array<i32>} : memref<1x2x8x8xf32, #tpu.memory_space<vmem>>, vector<1x1x8x8xf32>,
    %c1 = arith.constant 1 : index
    %c0_19 = arith.constant 0 : index
    %c0_20 = arith.constant 0 : index
    %22 = vector.load %arg5[%c1, %c0_19, %c0_20] : memref<2x32x32xf32, #tpu.memory_space<vmem>>, vector<1x32x32xf32>
    %23 = vector.shape_cast %22 : vector<1x32x32xf32> to vector<32x32xf32>
    %cst_21 = arith.constant dense<0.000000e+00> : vector<8x32xf32>
    %24 = tpu.matmul %4, %23, %cst_21 {dimension_numbers = #tpu.dot_dimension_numbers<[1], [0], [0], [1], [0, 0, 1, 1], [], []>} : vector<8x32xf32>, vector<32x32xf32>, vector<8x32xf32> -> vector<8x32xf32>
    %cst_22 = arith.constant dense<0.000000e+00> : vector<8x8xf32>
    %25 = tpu.matmul %24, %6, %cst_22 {dimension_numbers = #tpu.dot_dimension_numbers<[1], [1], [0], [0], [0, 0, 1, 0], [], []>} : vector<8x32xf32>, vector<8x32xf32>, vector<8x8xf32> -> vector<8x8xf32>
    %26 = vector.extract_strided_slice %8 {offsets = [0, 1], sizes = [8, 1], strides = [1, 1]} : vector<8x2xf32> to vector<8x1xf32>
    %27 = vector.broadcast %26 : vector<8x1xf32> to vector<8x8xf32>
    %28 = arith.addf %25, %27 : vector<8x8xf32>
    %c1_23 = arith.constant 1 : index
    %c0_24 = arith.constant 0 : index
    %29 = vector.load %arg10[%c1_23, %c0_24] : memref<2x8xf32, #tpu.memory_space<vmem>>, vector<1x8xf32>
    %30 = vector.broadcast %29 : vector<1x8xf32> to vector<8x8xf32>
    %31 = arith.addf %28, %30 : vector<8x8xf32>
    %c0_25 = arith.constant 0 : index
    %c1_26 = arith.constant 1 : index
    %c0_27 = arith.constant 0 : index
    %c0_28 = arith.constant 0 : index
    %32 = vector.load %arg9[%c0_25, %c1_26, %c0_27, %c0_28] : memref<1x2x8x8xf32, #tpu.memory_space<vmem>>, vector<1x1x8x8xf32>
    %33 = vector.shape_cast %32 : vector<1x1x8x8xf32> to vector<8x8xf32>
    %34 = vector.shape_cast %31 : vector<8x8xf32> to vector<1x1x8x8xf32>
    tpu.vector_store %arg9[%c0_25, %c1_26, %c0_27, %c0_28], %34 {strides = array<i32>} : memref<1x2x8x8xf32, #tpu.memory_space<vmem>>, vector<1x1x8x8xf32>,
    return
  }
  func.func @transform_0(%arg0: i32, %arg1: i32, %arg2: i32) -> (i32, i32, i32) {
    %c0_i32 = arith.constant 0 : i32
    %c0_i32_0 = arith.constant 0 : i32
    return %arg0, %arg2, %c0_i32 : i32, i32, i32
  }
  func.func @transform_1(%arg0: i32, %arg1: i32, %arg2: i32) -> (i32, i32, i32) {
    %c0_i32 = arith.constant 0 : i32
    %c0_i32_0 = arith.constant 0 : i32
    return %arg0, %arg1, %c0_i32 : i32, i32, i32
  }
  func.func @transform_2(%arg0: i32, %arg1: i32, %arg2: i32) -> (i32, i32, i32) {
    %c0_i32 = arith.constant 0 : i32
    %c0_i32_0 = arith.constant 0 : i32
    %c0_i32_1 = arith.constant 0 : i32
    %c0_i32_2 = arith.constant 0 : i32
    return %c0_i32, %c0_i32_0, %c0_i32_1 : i32, i32, i32
  }
  func.func @transform_3(%arg0: i32, %arg1: i32, %arg2: i32) -> (i32, i32) {
    %c0_i32 = arith.constant 0 : i32
    %c0_i32_0 = arith.constant 0 : i32
    %c0_i32_1 = arith.constant 0 : i32
    return %c0_i32, %c0_i32_0 : i32, i32
  }
  func.func @transform_4(%arg0: i32, %arg1: i32, %arg2: i32) -> (i32, i32) {
    %c0_i32 = arith.constant 0 : i32
    %c0_i32_0 = arith.constant 0 : i32
    %c0_i32_1 = arith.constant 0 : i32
    return %c0_i32, %c0_i32_0 : i32, i32
  }
  func.func @transform_5(%arg0: i32, %arg1: i32, %arg2: i32) -> (i32, i32) {
    %c0_i32 = arith.constant 0 : i32
    %c0_i32_0 = arith.constant 0 : i32
    %c0_i32_1 = arith.constant 0 : i32
    return %c0_i32, %c0_i32_0 : i32, i32
  }
  func.func @transform_6(%arg0: i32, %arg1: i32, %arg2: i32) -> (i32, i32, i32, i32) {
    %c0_i32 = arith.constant 0 : i32
    %c0_i32_0 = arith.constant 0 : i32
    return %arg0, %c0_i32, %arg2, %arg1 : i32, i32, i32, i32
  }
}

</mosaic_0001>

<bundles_post_ra>
// kernel: tpu_custom_call.1
= control target key start
LH: loop header
LB: loop body
LE: loop exit
PB: predicated region body
PF: predicated region fallthrough
CT: control target
= control target key end

     0   :  { %s1680_s0 = inlined_call_operand.hbm [shape: f32[2,8,32], index: 0, kind: input, shape index: {}]   ;;  %s1681_s1 = inlined_call_operand.hbm [shape: f32[2,8,32], index: 1, kind: input, shape index: {}]   ;;  %s1682_s2 = inlined_call_operand.hbm [shape: f32[2,32,32], index: 2, kind: input, shape index: {}]   ;;  %s1683_s3 = inlined_call_operand.vmem [shape: f32[2,32], index: 3, kind: input, shape index: {}]   ;;  %s1684_s4 = inlined_call_operand.vmem [shape: f32[2,32], index: 4, kind: input, shape index: {}]   ;;  %s1685_s5 = inlined_call_operand.vmem [shape: f32[2,1], index: 5, kind: input, shape index: {}]   ;;  %s1686_s6 = inlined_call_operand.hbm [shape: f32[2,2,8,8], index: 6, kind: output, shape index: {}]  }
   0x1   :  { %1694 = sst [smem:[#allocation18_spill]] %s1682_s2 }
   0x2   :  { %11 = vsyncpa [#allocation4], 0 }
   0x3   :  { %13 = vsyncpa [#allocation4 + $0x1], 0 }
   0x4   :  { %14 = vsyncpa [#allocation7], 0 }
   0x5   :  { %16 = vsyncpa [#allocation7 + $0x1], 0 }
   0x6   :  { %17 = vsyncpa [#allocation5], 0 }
   0x7   :  { %19 = vsyncpa [#allocation5 + $0x1], 0  ;;  %s1401_s21 = smov 0   ;;  %s1403_s22 = smov 0  }
   0x8   :  { %s1405_s23 = smov 0   ;;  %s1407_s24 = smov 0  }
   0x9   :  { %s1409_s25 = smov 0   ;;  %s1411_s26 = smov 0  }
   0xa LB: > { %1695 = sst [smem:[#allocation14_spill]] %s1339_s23  ;;  %s1432_s27 = sadd.s32 4294967295, %s1351_s26   ;;  %s1351_s26 = sphi %s1411_s26, %s25_s26   ;;  %s1347_s25 = sphi %s1409_s25, %s1718_s25   ;;  %s1343_s24 = sphi %s1407_s24, %s1717_s24   ;;  %s1339_s23 = sphi %s1405_s23, %s1716_s23   ;;  %s1335_s22 = sphi %s1403_s22, %s1720_s22   ;;  %s1331_s21 = sphi %s1401_s21, %s1719_s21  }
   0xb   : > { %1696 = sst [smem:[#allocation15_spill]] %s1347_s25  ;;  %s979_s28 = sadd.s32 4294967294, %s1351_s26  }
   0xc   : > { %p66_p0 = scmp.ne.s32.totalorder %s1335_s22, %s1331_s21  ;;  %p1687_p1 = scmp.eq.s32.totalorder %s1432_s27, 0 }
   0xd   : > { %p212_p3 = scmp.eq.s32.totalorder %s979_s28, 1  ;;  %p980_p5 = scmp.ge.s32.totalorder %s1351_s26, 1 }
   0xe   : > { %p1441_p4 = por %p1687_p1, %p66_p0  ;;  %p219_p7 = scmp.lt.s32.totalorder %s1351_s26, 3 }
   0xf   : > { %p1446_p6 = por %p212_p3, %p66_p0  ;;  %s1353_s8 = smov [#allocation8]  }
  0x10   : > { %s1697_s29 = scalar_select %p1441_p4, 1, 0 }
  0x11   : > { %s1698_s30 = scalar_select %p1446_p6, 1, 0 }
  0x12   : > { %p1451_p8 = pnand %p980_p5, %p219_p7  ;;  %s231_s9 = sshll.u32 %s1353_s8, 4  ;;  %s232_s9 = int_to_ptr.vmem [resolvable:$true] %s231_s9 }
  0x13   : > { %s44_s11 = sadd.s32 1, %s1347_s25  ;;  %s1701_s2 = sld [smem:[#allocation18_spill]] }
  0x14   : > { %s1699_s7 = scalar_select %p1451_p8, 1, 0 }
  0x15   : > { %p1093_p9 = pneg %p1451_p8 }
  0x17   : > { %p1460_p11 = pnand %p1093_p9, %p1687_p1 }
  0x19   : > { %s1173_s14 = scalar_lea.hbm %s1701_s2, 1024  ;;  %p1175_p13 = pneg %p1460_p11 }
  0x1a   : > { %p1174_p12 = scmp.ne.s32.totalorder %s1701_s2, %s1173_s14  ;;  %p1180_p5 = scmp.lt.u32.totalorder %s1173_s14, %s1701_s2 }
  0x1c   : > { %p1176_p0 = pnand %p1175_p13, %p1174_p12 }
  0x1e   : > { %p1177_p3 = pneg %p1176_p0 }
  0x20   : > { %p1182_p7 = pnand %p1180_p5, %p1177_p3 }
  0x22   : > { %1185 = shalt.err (!%p1182_p7)
}
  0x23   : > { %s1186_s19 = scalar_lea.vmem %s232_s9, 1024  ;;  %p1194_p2 = scmp.lt.s32.totalorder %s232_s9, %s232_s9 }
  0x24   : > { %p1187_p9 = scmp.ne.s32.totalorder %s232_s9, %s1186_s19  ;;  %p1195_p6 = scmp.lt.s32.totalorder %s1186_s19, %s1186_s19 }
  0x26   : > { %p1189_p10 = pnand %p1187_p9, %p1175_p13  ;;  %p1196_p4 = por %p1195_p6, %p1194_p2 }
  0x28   : > { %p1190_p1 = pneg %p1189_p10 }
  0x2a   : > { %p1197_p8 = pnand %p1196_p4, %p1190_p1 }
  0x2c   : > { %1200 = shalt.err (!%p1197_p8)
}
  0x2d   : > { %s1354_s20 = smov 128   ;;  %s1355_s28 = smov 8  }
  0x2e   : > { %1096 = dma.hbm_to_vmem [thread:$0]  (!%p1460_p11), %s1701_s2, 1024, %s232_s9, [#allocation7], %s1354_s20, %s1354_s20, %s1355_s28  }
  0x2f   : > { %p46_p1 = scmp.ge.s32.totalorder %s44_s11, 2  ;;  %s53_s13 = sadd.s32 1, %s1339_s23 }
  0x30   : > { %p60_p2 = scmp.ne.s32.totalorder %s1339_s23, %s1335_s22  ;;  %p61_p4 = scmp.eq.s32.totalorder %s1351_s26, 0 }
  0x31   : > { %s1722_s11 = smov (%p46_p1, %s44_s11), 0  ;;  %p1704_p8 = scmp.eq.s32.totalorder %s1432_s27, 1 }
  0x32   : > { %1702 = sst [smem:[#allocation16_spill]] %s1722_s11  ;;  %p1487_p6 = por %p61_p4, %p60_p2 }
  0x33   : > { %p1493_p10 = por %p1704_p8, %p60_p2  ;;  %s48_s15 = ssub.s32 %s1347_s25, %s1722_s11 }
  0x34   : > { %p1109_p11 = scmp.lt.s32.totalorder %s1351_s26, 2  ;;  %p51_p12 = scmp.eq.s32.totalorder %s48_s15, 0 }
  0x35   : > { %s1705_s10 = scalar_select %p1493_p10, 1, 0 }
  0x36   : > { %s254_s9 = sand.u32 1, %s1339_s23   ;;  %s984_s18 = sshll.u32 %s1347_s25, 7 }
  0x37   : > { %s1501_s16 = sshll.u32 %s254_s9, 3  ;;  %s1510_s28 = scalar_lea.hbm %s1680_s0, %s984_s18 }
  0x38   : > { %s1504_s17 = scalar_select %p51_p12, %s1339_s23, %s53_s13  }
  0x39   : > { %s258_s8 = scalar_lea.vmem [#allocation3], %s1501_s16  ;;  %p1517_p13 = pnand %p1109_p11, %p1487_p6 }
  0x3a   : > { %1706 = sst [smem:[#allocation17_spill]] %s1504_s17  ;;  %s266_s12 = sshll.u32 %s258_s8, 4  ;;  %s1513_s12 = int_to_ptr.vmem [resolvable:$true] %s266_s12 }
  0x3b   : > { %s1524_s19 = scalar_lea.hbm %s1681_s1, %s984_s18  ;;  %s273_s20 = sand.u32 1, %s1351_s26  }
  0x3c   : > { %s255_s11 = scalar_lea.sflag [#allocation4], %s254_s9  ;;  %s1201_s25 = scalar_lea.hbm %s1510_s28, 128 }
  0x3d   : > { %p1202_p0 = scmp.ne.s32.totalorder %s1510_s28, %s1201_s25  ;;  %p1203_p3 = pneg %p1517_p13 }
  0x3e   : > { %s1206_s17 = scalar_lea.hbm %s1680_s0, 256  ;;  %p1207_p9 = scmp.lt.u32.totalorder %s1510_s28, %s1680_s0 }
  0x3f   : > { %p1204_p5 = pnand %p1203_p3, %p1202_p0  ;;  %p1208_p1 = scmp.lt.u32.totalorder %s1206_s17, %s1201_s25 }
  0x40   : > { %p1210_p4 = scmp.lt.u32.totalorder %s1201_s25, %s1510_s28 }
  0x41   : > { %p1205_p7 = pneg %p1204_p5  ;;  %p1209_p2 = por %p1208_p1, %p1207_p9 }
  0x43   : > { %p1211_p6 = por %p1210_p4, %p1209_p2 }
  0x45   : > { %p1212_p8 = pnand %p1211_p6, %p1205_p7 }
  0x47   : > { %1215 = shalt.err (!%p1212_p8)
}
  0x48   : > { %s1216_s9 = scalar_lea.vmem %s1513_s12, 128  ;;  %s1356_s18 = smov [#allocation3]  }
  0x49   : > { %p1217_p11 = scmp.ne.s32.totalorder %s1513_s12, %s1216_s9  ;;  %s1221_s13 = sshll.u32 %s1356_s18, 4  ;;  %s1222_s13 = int_to_ptr.vmem [resolvable:$false] %s1221_s13 }
  0x4a   : > { %s1223_s23 = scalar_lea.vmem %s1222_s13, 256  ;;  %p1224_p5 = scmp.lt.s32.totalorder %s1513_s12, %s1222_s13 }
  0x4b   : > { %p1219_p12 = pnand %p1217_p11, %p1203_p3  ;;  %p1225_p9 = scmp.lt.s32.totalorder %s1223_s23, %s1216_s9 }
  0x4d   : > { %p1220_p0 = pneg %p1219_p12  ;;  %p1226_p1 = por %p1225_p9, %p1224_p5 }
  0x4f   : > { %p1227_p2 = pnand %p1226_p1, %p1220_p0 }
  0x51   : > { %1230 = shalt.err (!%p1227_p2)
}
  0x52   : > { %1100 = dma.hbm_to_vmem [thread:$0]  (!%p1517_p13), %s1510_s28, 128, %s1513_s12, %s255_s11  }
  0x53   : > { %s277_s25 = scalar_lea.vmem [#allocation6], %s1501_s16  ;;  %s274_s14 = scalar_lea.sflag [#allocation7], %s273_s20 }
  0x54   : > { %s285_s17 = sshll.u32 %s277_s25, 4  ;;  %s1231_s8 = scalar_lea.hbm %s1524_s19, 128  ;;  %s286_s17 = int_to_ptr.vmem [resolvable:$true] %s285_s17 }
  0x55   : > { %p1232_p7 = scmp.ne.s32.totalorder %s1524_s19, %s1231_s8  ;;  %s1236_s18 = scalar_lea.hbm %s1681_s1, 256 }
  0x56   : > { %p1237_p8 = scmp.lt.u32.totalorder %s1524_s19, %s1681_s1  ;;  %p1238_p11 = scmp.lt.u32.totalorder %s1236_s18, %s1231_s8 }
  0x57   : > { %p1234_p4 = pnand %p1232_p7, %p1203_p3  ;;  %p1240_p0 = scmp.lt.u32.totalorder %s1231_s8, %s1524_s19 }
  0x58   : > { %p1239_p12 = por %p1238_p11, %p1237_p8 }
  0x59   : > { %p1235_p6 = pneg %p1234_p4 }
  0x5a   : > { %p1241_p5 = por %p1240_p0, %p1239_p12 }
  0x5c   : > { %p1242_p9 = pnand %p1241_p5, %p1235_p6 }
  0x5e   : > { %1245 = shalt.err (!%p1242_p9)
}
  0x5f   : > { %s1246_s11 = scalar_lea.vmem %s286_s17, 128  ;;  %s1357_s16 = smov [#allocation6]  }
  0x60   : > { %p1247_p1 = scmp.ne.s32.totalorder %s286_s17, %s1246_s11  ;;  %s1251_s28 = sshll.u32 %s1357_s16, 4  ;;  %s1252_s28 = int_to_ptr.vmem [resolvable:$false] %s1251_s28 }
  0x61   : > { %s1253_s12 = scalar_lea.vmem %s1252_s28, 256  ;;  %p1254_p4 = scmp.lt.s32.totalorder %s286_s17, %s1252_s28 }
  0x62   : > { %p1249_p2 = pnand %p1247_p1, %p1203_p3  ;;  %p1255_p10 = scmp.lt.s32.totalorder %s1253_s12, %s1246_s11 }
  0x64   : > { %p1250_p7 = pneg %p1249_p2  ;;  %p1256_p8 = por %p1255_p10, %p1254_p4 }
  0x66   : > { %p1257_p11 = pnand %p1256_p8, %p1250_p7 }
  0x68   : > { %1260 = shalt.err (!%p1257_p11)
}
  0x69   : > { %1103 = dma.hbm_to_vmem [thread:$0]  (!%p1517_p13), %s1524_s19, 128, %s286_s17, %s274_s14  }
  0x6a   : > { %p1708_p6 = scmp.ne.s32.totalorder %s1699_s7, 0 }
  0x6b   : > { %s1577_s20 = sand.u32 (!%p1708_p6), 1, %s1335_s22   ;;  %p1709_p10 = scmp.ne.s32.totalorder (!%p1708_p6), %s1697_s29, 0 }
  0x6c   : > { %294 = sbr.rel (%p1708_p6) target bundleno = 799 (0x31f), region = 44  ;;  %s988_s25 = sshll.u32 (!%p1708_p6), %s1577_s20, 3 }
  0x6d   : > { %s297_s8 = scalar_lea.sflag (!%p1708_p6), [#allocation4], %s1577_s20  ;;  %s1581_s2 = scalar_lea.vmem (!%p1708_p6), [#allocation3], %s988_s25 }
  0x73   : > { %1314 = dma.done.wait (%p1709_p10), %s297_s8, 128  }
  0x74   : > { %1316 = vsyncadd (%p1709_p10), %s297_s8, 4294967168  ;;  %s305_s15 = sand.u32 1, %s1432_s27   ;;  %s309_s19 = scalar_lea.vmem [#allocation6], %s988_s25 }
  0x75   : > { %s306_s7 = scalar_lea.sflag [#allocation7], %s305_s15 }
  0x76   : > { %1318 = dma.done.wait (%p1709_p10), %s306_s7, 128  }
  0x77   : > { %1320 = vsyncadd (%p1709_p10), %s306_s7, 4294967168  ;;  %p1710_p13 = scmp.eq.s32.totalorder %s1432_s27, 0 }
  0x79   : > { %1322 = dma.done.wait (%p1710_p13), [#allocation7], 1024   ;;  %p1711_p3 = pmov %p1710_p13 }
  0x7a   : > { %v1358_v0 = vmov 0.0   ;;  %vm1359_vm0 = vmmov 0   ;;  %v1360_v1 = vmov 0   ;;  %vm359_vm1 = vcmask 261120   ;;  %v352_v2 = vld [vmem:[%s309_s19] sm:$0xff]  ;;  %v518_v3 = vld [vmem:[#allocation8] sm:$0xff] }
  0x7b   : > { %1324 = vsyncadd (%p1711_p3), [#allocation7], 4294966272  ;;  %1029 = vmatprep.subr.mxu0 %v1358_v0  ;;  %1031 = vmatprep.mubr.msk.f32.mxu0 %vm1359_vm0, %v1358_v0  ;;  %v351_v4 = vld [vmem:[%s1684_s4] sm:$0x3]  ;;  %v519_v5 = vld [vmem:[#allocation8 + $0x8] sm:$0xff]  ;;  %v1361_v7 = vmov 0.0|0.0  }
  0x7c   : > { %1170 = vset.pattern.permute.xlu0 %v1360_v1  ;;  %1034 = vmatprep.subr.mxu1 %v1358_v0  ;;  %v520_v6 = vld [vmem:[#allocation8 + $0x10] sm:$0xff]  ;;  %v1072_v8 = vpack.c.bf16 %v519_v5, %v518_v3  ;;  %v521_v9 = vld [vmem:[#allocation8 + $0x18] sm:$0xff]  ;;  %v438_v13 = vld [vmem:[%s1581_s2] sm:$0xff]  ;;  %v1362_v14 = vmov 1   ;;  %vm436_vm2 = vcmask 58368   ;;  %s991_s13 = sshll.u32 %s1577_s20, 4 }
  0x7d   : > { %1036 = vmatprep.mubr.msk.f32.mxu1 %vm1359_vm0, %v1358_v0  ;;  %1030 = vmatpush3.xpose.msk.msra.mxu0 %vm359_vm1, %v352_v2  ;;  %v353_v10 = vld [vmem:[%s1685_s5] sm:$0x3]  ;;  %v1075_v12 = vpack.c.bf16 %v521_v9, %v520_v6  ;;  %v682_v20 = vld [vmem:[#allocation8 + $0x20] sm:$0xff]  ;;  %v683_v21 = vld [vmem:[#allocation8 + $0x28] sm:$0xff]  ;;  %vm679_vm3 = vcmask 64512   ;;  %s346_s23 = scalar_lea.vmem [#allocation9], %s991_s13 }
  0x7e   : > { %1071 = vmatprep.subr.bf16.mxu0 %v1361_v7  ;;  %v440_v11 = vld [vmem:[%s1683_s3] sm:$0x3]  ;;  %356 = vperm.xlu0 %1170, %v353_v10   ;;  %v1078_v23 = vpack.c.bf16 %v683_v21, %v682_v20  ;;  %v684_v24 = vld [vmem:[#allocation8 + $0x30] sm:$0xff]  ;;  %s1010_s11 = sshll.u32 %s1343_s24, 8  ;;  %s857_s16 = sshll.u32 %s346_s23, 4  ;;  %s1630_s16 = int_to_ptr.vmem [resolvable:$true] %s857_s16 }
  0x7f   : > { %1035 = vmatpush3.xpose.msk.msra.mxu1 %vm359_vm1, %v440_v11  ;;  %1171 = vset.pattern.permute.xlu1 %v1362_v14  ;;  %v685_v25 = vld [vmem:[#allocation8 + $0x38] sm:$0xff]  ;;  %s1628_s25 = scalar_lea.hbm %s1686_s6, %s1010_s11  ;;  %s842_s24 = scalar_lea.sflag [#allocation5], %s1577_s20 }
  0x80   : > { %1032 = vmatmul.mubr.msk.f32.vlgmr.msra.gmra.mrb[0].mxu0 %vm359_vm1, %v351_v4  ;;  %1050 = vmatprep.subr.mxu1 %v1358_v0  ;;  %v1081_v28 = vpack.c.bf16 %v685_v25, %v684_v24  ;;  %s1261_s8 = scalar_lea.vmem %s1630_s16, 256  ;;  %p1712_p0 = scmp.ne.s32.totalorder %s1705_s10, 0 }
  0x81   : > { %1073 = vmatpush3.bf16.msra.mxu0 %v1072_v8  ;;  %1047 = vmatprep.mubr.msk.f32.mxu0 %vm1359_vm0, %v1358_v0  ;;  %p1262_p12 = scmp.ne.s32.totalorder %s1630_s16, %s1261_s8  ;;  %s1363_s2 = smov [#allocation9]  }
  0x82   : > { %1074 = vmatprep.subr.bf16.mxu0 %v1361_v7  ;;  %1037 = vmatmul.mubr.msk.f32.vlgmr.msra.gmra.mrb[0].mxu1 %vm359_vm1, %v438_v13  ;;  %s1265_s15 = sshll.u32 %s1363_s2, 4  ;;  %s1266_s15 = int_to_ptr.vmem [resolvable:$false] %s1265_s15 }
  0x83   : > { %1051 = vmatpush3.xpose.msk.msra.mxu1 %vm359_vm1, %v352_v2  ;;  %1052 = vmatprep.mubr.msk.f32.mxu1 %vm1359_vm0, %v1358_v0  ;;  %p1263_p5 = pnand %p1262_p12, %p1712_p0  ;;  %s1267_s7 = scalar_lea.vmem %s1266_s15, 512 }
  0x84   : > { %1077 = vmatprep.subr.bf16.mxu1 %v1361_v7  ;;  %p1268_p1 = scmp.lt.s32.totalorder %s1630_s16, %s1266_s15  ;;  %p1269_p2 = scmp.lt.s32.totalorder %s1267_s7, %s1261_s8 }
  0x85   : > { %1076 = vmatpush3.bf16.msra.mxu0 %v1075_v12  ;;  %p1264_p9 = pneg %p1263_p5 }
  0x86   : > { %1066 = vmatprep.subr.mxu0 %v1358_v0  ;;  %p1270_p7 = por %p1269_p2, %p1268_p1 }
  0x88   : > { %1048 = vmatmul.mubr.msk.f32.vlgmr.msra.gmra.mrb[2].mxu0 %vm359_vm1, %v438_v13  ;;  %p1271_p4 = pnand %p1270_p7, %p1264_p9 }
  0x89   : > { %1068 = vmatprep.mubr.msk.f32.mxu0 %vm1359_vm0, %v1358_v0 }
  0x8e   : > { %1067 = vmatpush3.xpose.msk.msra.mxu0 %vm359_vm1, %v352_v2 }
  0xfd   : > { %v357_v15 = vpop.permute.xlu0 %356 }
 0x153   : > { %v432_v16 = vpop.f32.mrb[0].mxu0 }
 0x154   : > { %v433_v17 = vadd.f32 %v432_v16, %v357_v15  ;;  %v1033_v18 = vpop.f32.mrb[1].mxu0 }
 0x155   : > { %v514_v19 = vpop.f32.mrb[0].mxu1 }
 0x156   : > { %437 = vst.msk [vmem:[#allocation2] sm:$0x3] %vm436_vm2, %v433_v17  ;;  %594 = vperm.xlu0 %1170, %v514_v19   ;;  %v1038_v22 = vpop.f32.mrb[1].mxu1  ;;  %757 = vperm.xlu1 %1171, %v514_v19  }
 0x15a   : > { %1172 = vset.pattern.permute.xlu0 %v1362_v14 }
 0x15b   : > { %v588_v26 = vpop.f32.mrb[2].mxu0 }
 0x15c   : > { %v1049_v27 = vpop.f32.mrb[3].mxu0  ;;  %1053 = vmatmul.mubr.msk.f32.vlgmr.msra.gmra.mrb[2].mxu1 %vm359_vm1, %v588_v26 }
 0x15d   : > { %1079 = vmatpush3.bf16.msra.mxu1 %v1078_v23  ;;  %1063 = vmatprep.mubr.msk.f32.mxu1 %vm1359_vm0, %v1358_v0  ;;  %v999_v33 = vld [vmem:[#allocation2] ss:$0 sm:$0xff]  ;;  %v1003_v41 = vld [vmem:[#allocation2 + $0x1] ss:$0 sm:$0xff] }
 0x15e   : > { %1080 = vmatprep.subr.bf16.mxu1 %v1361_v7 }
 0x161   : > { %1082 = vmatpush3.bf16.msra.mxu1 %v1081_v28 }
 0x164   : > { %1064 = vmatmul.mubr.msk.f32.vlgmr.msra.gmra.mrb[4].mxu1 %vm359_vm1, %v438_v13 }
 0x1d5   : > { %v595_v29 = vpop.permute.xlu0 %594  ;;  %v758_v37 = vpop.permute.xlu1 %757 }
 0x22f   : > { %v669_v30 = vpop.f32.mrb[2].mxu1 }
 0x230   : > { %v670_v31 = vadd.f32 %v669_v30, %v595_v29  ;;  %v1054_v32 = vpop.f32.mrb[3].mxu1 }
 0x232   : > { %v678_v34 = vadd.f32 %v999_v33, %v670_v31 }
 0x234   : > { %680 = vst.msk [vmem:[%s346_s23] sm:$0xff] %vm679_vm3, %v678_v34 }
 0x237   : > { %v752_v35 = vpop.f32.mrb[4].mxu1 }
 0x238   : > { %v1065_v36 = vpop.f32.mrb[5].mxu1  ;;  %1069 = vmatmul.mubr.msk.f32.vlgmr.msra.gmra.mrb[4].mxu0 %vm359_vm1, %v752_v35 }
 0x30b   : > { %v829_v38 = vpop.f32.mrb[4].mxu0 }
 0x30c   : > { %v830_v39 = vadd.f32 %v829_v38, %v758_v37  ;;  %v1070_v40 = vpop.f32.mrb[5].mxu0 }
 0x30e   : > { %v838_v42 = vadd.f32 %v1003_v41, %v830_v39 }
 0x310   : > { %1004 = vst.msk [vmem:[%s346_s23 + $0x8] sm:$0xff] %vm679_vm3, %v838_v42 }
 0x311   : > { %1274 = shalt.err (!%p1271_p4)
}
 0x312   : > { %s1275_s19 = scalar_lea.hbm %s1628_s25, 256  ;;  %s1279_s27 = scalar_lea.hbm %s1686_s6, 512 }
 0x313   : > { %p1276_p8 = scmp.ne.s32.totalorder %s1628_s25, %s1275_s19  ;;  %p1280_p10 = scmp.lt.u32.totalorder %s1628_s25, %s1686_s6 }
 0x314   : > { %p1281_p13 = scmp.lt.u32.totalorder %s1279_s27, %s1275_s19  ;;  %p1283_p12 = scmp.lt.u32.totalorder %s1275_s19, %s1628_s25 }
 0x315   : > { %p1277_p11 = pnand %p1276_p8, %p1712_p0 }
 0x316   : > { %p1282_p3 = por %p1281_p13, %p1280_p10 }
 0x317   : > { %p1278_p6 = pneg %p1277_p11 }
 0x318   : > { %p1284_p5 = por %p1283_p12, %p1282_p3 }
 0x31a   : > { %p1285_p9 = pnand %p1284_p5, %p1278_p6 }
 0x31c   : > { %1288 = shalt.err (!%p1285_p9)
}
 0x31d   : > { %s1364_s18 = smov 128   ;;  %s1365_s13 = smov 8  }
 0x31e   : > { %1091 = dma.vmem_to_hbm [thread:$0]  (%p1712_p0), %s1630_s16, 256, %s1628_s25, %s842_s24, %s1364_s18, %s1364_s18, %s1365_s13  }
 0x31f PF: > { %s872_s23 = sand.u32 1, %s1331_s21   ;;  %p1713_p1 = scmp.ne.s32.totalorder %s1698_s30, 0 }
 0x320   : > { %p1714_p2 = scmp.ge.s32.totalorder %s1351_s26, 2  ;;  %s873_s11 = scalar_lea.sflag [#allocation5], %s872_s23 }
 0x322   : > { %p1105_p7 = pnand %p1714_p2, %p1713_p1 }
 0x324   : > { %1326 = dma.done.wait (!%p1105_p7), %s873_s11, 256  }
 0x325   : > { %1328 = vsyncadd (!%p1105_p7), %s873_s11, 4294967040  ;;  %s25_s26 = sadd.s32 1, %s1351_s26   ;;  %s1715_s28 = sld [smem:[#allocation14_spill]] }
 0x326   : > { %p22_p4 = scmp.ge.s32.totalorder %s25_s26, 4   ;;  %s1716_s23 = sld [smem:[#allocation17_spill]] }
 0x327   : > { %s1717_s24 = sld [smem:[#allocation15_spill]]  ;;  %s1718_s25 = sld [smem:[#allocation16_spill]] }
 0x328   : > { %s1719_s21 = smov %s1335_s22  ;;  %24 = sbr.rel (!%p22_p4) target bundleno = 10 (0xa), region = 112 }
 0x32b   : > { %s1720_s22 = smov %s1715_s28 }
 0x32f   :  { %878 = vsyncpa [#allocation4], 1 }
 0x330   :  { %880 = vsyncpa [#allocation4 + $0x1], 1 }
 0x331   :  { %881 = vsyncpa [#allocation7], 1 }
 0x332   :  { %883 = vsyncpa [#allocation7 + $0x1], 1 }
 0x333   :  { %884 = vsyncpa [#allocation5], 1 }
 0x334   :  { %886 = vsyncpa [#allocation5 + $0x1], 1 }

</bundles_post_ra>
